<compile_context>
chip_gen: v5e
topology: v5e:2x2
jax: 0.10.0
libtpu: 0.0.40
codegen_flags: <defaults>
</compile_context>

<pallas_src>
import functools
import math

import jax
import jax.numpy as jnp
from jax.experimental import pallas as pl
from jax.experimental.pallas import tpu as pltpu

_LANE = 128


def _cdiv(a, b):
    return -(-a // b)


def _vmem_capacity_bytes():
    try:
        return int(pltpu.get_tpu_info().vmem_capacity_bytes)
    except Exception:
        return 64 * 1024 * 1024        # conservative (v7x-sized) fallback


def _pick_tb(B, C, itemsize, per_block_budget):
    # Output block is (tb, 2): tb must be a multiple of 8 or equal to B (full dim).
    if B % 8 != 0 or B <= 8:
        return B
    limit = B // 2                      # keep >= 2 batch tiles for v7x megacore
    cap_rows = max(8, per_block_budget // max(1, C * _LANE * itemsize))
    tb = 8
    cand = 16
    while cand <= limit:
        if B % cand == 0 and cand <= cap_rows:
            tb = cand
        cand += 8
    return tb


def _pick_thw(HW, tb, C, itemsize, per_block_budget):
    bytes_per_lane = max(1, tb * C * itemsize)
    max_lanes = per_block_budget // bytes_per_lane
    if HW <= max(_LANE, max_lanes):
        return HW                       # whole spatial extent in one (full-dim) block
    return max(_LANE, (max_lanes // _LANE) * _LANE)   # lane-dense tile (< HW here)


def _eca_kernel(x_ref, wconv_ref, wlin_ref, out_ref, acc_ref, *, C, HW, k, rem):
    hw_step = pl.program_id(1)
    n_hw = pl.num_programs(1)

    # ---- zero the per-batch-tile accumulator at the start of the spatial sweep ----
    @pl.when(hw_step == 0)
    def _():
        acc_ref[...] = jnp.zeros_like(acc_ref)

    # ---- partial spatial sum (fused widening reduce; no f32 tile copy) ----
    if rem == 0:
        acc_ref[...] += jnp.sum(x_ref[...], axis=-1, dtype=jnp.float32)
    else:
        @pl.when(hw_step < n_hw - 1)
        def _():
            acc_ref[...] += jnp.sum(x_ref[...], axis=-1, dtype=jnp.float32)

        @pl.when(hw_step == n_hw - 1)
        def _():
            # Ragged last tile: out-of-bounds lanes hold unspecified data -> mask them.
            x = x_ref[...]
            lane = jax.lax.broadcasted_iota(jnp.int32, x.shape, x.ndim - 1)
            xm = jnp.where(lane < rem, x, jnp.zeros_like(x))
            acc_ref[...] += jnp.sum(xm, axis=-1, dtype=jnp.float32)

    # ---- epilogue: conv1d over channels + relu + linear(C,2) + relu + softmax ----
    @pl.when(hw_step == n_hw - 1)
    def _():
        pad = k // 2
        avg = acc_ref[...] * (1.0 / float(HW))          # AdaptiveAvgPool2d(1) -> (tb, C)
        tb = avg.shape[0]

        # Conv1d(1, 1, k, padding=k//2, bias=False) along the channel (lane) axis,
        # fully in registers (no VMEM pad scratch).
        if pad > 0:
            z = jnp.zeros((tb, pad), jnp.float32)
            padded = jnp.concatenate([z, avg, z], axis=-1)      # (tb, C + 2*pad)
        else:
            padded = avg
        conv = jnp.zeros((tb, C), jnp.float32)
        for j in range(k):                               # k is static and tiny
            conv = conv + wconv_ref[0, j] * padded[:, j:j + C]
        conv = jnp.maximum(conv, 0.0)                    # relu_2

        # Linear(C, 2, bias=False) as VPU broadcast-mul + lane reduction.
        w = wlin_ref[...].astype(jnp.float32)            # (2, C)
        lin = jnp.sum(conv[:, None, :] * w[None, :, :], axis=-1)   # (tb, 2)
        lin = jnp.maximum(lin, 0.0)                      # relu

        # softmax over the 2-way class axis (torch dim=1)
        m = jnp.max(lin, axis=-1, keepdims=True)
        e = jnp.exp(lin - m)
        out_ref[...] = (e / jnp.sum(e, axis=-1, keepdims=True)).astype(out_ref.dtype)


def efficient_channel_attention(x, w_conv, w_linear, *, thw=None):
    """x: (B, C, H, W) f32 or bf16.  w_conv: (k,).  w_linear: (2, C) torch Linear weight.

    Returns (B, 2, 1, 1) float32, matching the PyTorch module output."""
    B, C, H, W = x.shape
    HW = H * W
    k = int(w_conv.shape[0])
    itemsize = jnp.dtype(x.dtype).itemsize

    # Generation-aware block / VMEM sizing (64 MiB on v7x, 128 MiB on v5e/v6e).
    vmem_cap = _vmem_capacity_bytes()
    per_block_budget = max(2 * 1024 * 1024, vmem_cap // 4)   # one pipeline buffer of x
    vmem_limit = (vmem_cap * 3) // 4                          # headroom vs physical VMEM

    tb = _pick_tb(B, C, itemsize, per_block_budget)
    if thw is None:
        thw = _pick_thw(HW, tb, C, itemsize, per_block_budget)
    else:
        # Caller override: keep the (8,128) rule legal (multiple of 128 or full dim).
        thw = HW if (HW <= _LANE or thw >= HW) else max(_LANE, (thw // _LANE) * _LANE)
    n_hw = _cdiv(HW, thw)
    rem = HW % thw                                            # ragged last-tile lanes

    x_flat = x.reshape(B, C, HW)                              # no jnp.pad: x read once
    wconv_smem = w_conv.reshape(1, k).astype(jnp.float32)     # conv taps -> SMEM scalars
    wlin = w_linear.astype(jnp.float32)                       # (2, C), VMEM-resident

    kernel = functools.partial(_eca_kernel, C=C, HW=HW, k=k, rem=rem)

    out = pl.pallas_call(
        kernel,
        out_shape=jax.ShapeDtypeStruct((B, 2), jnp.float32),
        grid_spec=pltpu.PrefetchScalarGridSpec(
            num_scalar_prefetch=0,
            grid=(B // tb, n_hw),                             # reduction axis last
            in_specs=[
                pl.BlockSpec((tb, C, thw), lambda b, s: (b, 0, s)),   # streamed x tiles
                pl.BlockSpec(memory_space=pltpu.MemorySpace.SMEM),    # conv taps (1, k)
                pl.BlockSpec(memory_space=pltpu.MemorySpace.VMEM),    # linear weight (2, C)
            ],
            out_specs=pl.BlockSpec((tb, 2), lambda b, s: (b, 0)),
            scratch_shapes=[pltpu.VMEM((tb, C), jnp.float32)],        # spatial-sum accumulator
        ),
        compiler_params=pltpu.CompilerParams(
            dimension_semantics=("parallel", "arbitrary"),
            vmem_limit_bytes=int(vmem_limit)),
    )(x_flat, wconv_smem, wlin)

    return out.reshape(B, 2, 1, 1)


def _reference(x, w_conv, w_linear):
    """Pure-JAX reference mirroring the PyTorch forward (f32 math)."""
    B, C, H, W = x.shape
    k = int(w_conv.shape[0])
    pad = k // 2
    xf = x.astype(jnp.float32)
    avg = jnp.mean(xf.reshape(B, C, -1), axis=-1)                  # (B, C)
    padded = jnp.pad(avg, ((0, 0), (pad, pad)))
    conv = sum(w_conv.astype(jnp.float32)[j] * padded[:, j:j + C] for j in range(k))
    conv = jnp.maximum(conv, 0.0)
    lin = conv @ w_linear.astype(jnp.float32).T                    # (B, 2)
    lin = jnp.maximum(lin, 0.0)
    sm = jax.nn.softmax(lin, axis=1)
    return sm.reshape(B, 2, 1, 1)


if __name__ == "__main__":
    key = jax.random.PRNGKey(0)
    kx, kc, kl, kx2 = jax.random.split(key, 4)

    # Shapes consistent with the module: c=16 -> t=int((log2(16)+1)/2)=2 -> k=3, pad=1.
    B, C, H, W = 2, 16, 8, 8
    b_hyper, gamma = 1, 2
    t = int(abs((math.log(C, 2) + b_hyper) / gamma))
    k = t if t % 2 else t + 1

    x = jax.random.normal(kx, (B, C, H, W), dtype=jnp.float32)
    w_conv = jax.random.normal(kc, (k,), dtype=jnp.float32) * 0.5       # Conv1d(1,1,k) weight
    w_linear = jax.random.normal(kl, (2, C), dtype=jnp.float32) * 0.1   # Linear(C,2) weight

    # Default path (HW <= 128: single spatial step), bf16 storage, f32 math in-kernel.
    x_bf16 = x.astype(jnp.bfloat16)
    out = jax.block_until_ready(efficient_channel_attention(x_bf16, w_conv, w_linear))
    ref = _reference(x_bf16, w_conv, w_linear)
    assert out.shape == (B, 2, 1, 1)
    assert jnp.allclose(out, ref, atol=1e-5, rtol=1e-5), (out, ref)

    # Second check: multi-tile batch (B=16 -> tb=8, two "parallel" tiles) and a
    # ragged multi-step spatial reduction (HW=900, thw=256 -> 4 steps, last tile
    # masks the 132 valid lanes in-kernel; no wrapper-side padding).
    B2, H2, W2 = 16, 30, 30
    x2 = jax.random.normal(kx2, (B2, C, H2, W2), dtype=jnp.float32).astype(jnp.bfloat16)
    out2 = jax.block_until_ready(
        efficient_channel_attention(x2, w_conv, w_linear, thw=256))
    ref2 = _reference(x2, w_conv, w_linear)
    assert out2.shape == (B2, 2, 1, 1)
    assert jnp.allclose(out2, ref2, atol=1e-5, rtol=1e-5), (out2, ref2)

    print("KERNEL_OK")
</pallas_src>

<mosaic_0001>
module attributes {stable_mosaic.version = 11 : i64} {
  func.func @_eca_kernel(%arg0: i32, %arg1: i32, %arg2: memref<2x16x64xbf16, #tpu.memory_space<vmem>>, %arg3: memref<1x3xf32, #tpu.memory_space<smem>>, %arg4: memref<2x16xf32, #tpu.memory_space<vmem>>, %arg5: memref<2x2xf32, #tpu.memory_space<vmem>>, %arg6: memref<2x16xf32, #tpu.memory_space<vmem>>) attributes {dimension_semantics = [#tpu.dimension_semantics<parallel>, #tpu.dimension_semantics<arbitrary>], iteration_bounds = array<i64: 1, 1>, scalar_prefetch = 0 : i64, scratch_operands = 1 : i64, tpu.core_type = #tpu.core_type<tc>, window_params = [{transform_indices = @transform_0, window_bounds = array<i64: 2, 16, 64>}, {transform_indices = @transform_1, window_bounds = array<i64: 1, 3>}, {pipeline_mode = #tpu.pipeline_mode<synchronous>, transform_indices = @transform_2, window_bounds = array<i64: 2, 16>}, {transform_indices = @transform_3, window_bounds = array<i64: 2, 2>}]} {
    %c0_i32 = arith.constant 0 : i32
    %0 = arith.cmpi eq, %arg1, %c0_i32 : i32
    %1 = arith.extui %0 : i1 to i32
    %c0_i32_0 = arith.constant 0 : i32
    %2 = arith.cmpi ne, %1, %c0_i32_0 : i32
    scf.if %2 {
      %cst_9 = arith.constant 0.000000e+00 : f32
      %12 = vector.broadcast %cst_9 : f32 to vector<2x16xf32>
      %c0_10 = arith.constant 0 : index
      %c0_11 = arith.constant 0 : index
      %13 = vector.load %arg6[%c0_10, %c0_11] : memref<2x16xf32, #tpu.memory_space<vmem>>, vector<2x16xf32>
      tpu.vector_store %arg6[%c0_10, %c0_11], %12 {strides = array<i32>} : memref<2x16xf32, #tpu.memory_space<vmem>>, vector<2x16xf32>,
    } else {
    }
    %c0 = arith.constant 0 : index
    %c0_1 = arith.constant 0 : index
    %3 = vector.load %arg6[%c0, %c0_1] : memref<2x16xf32, #tpu.memory_space<vmem>>, vector<2x16xf32>
    %c0_2 = arith.constant 0 : index
    %c0_3 = arith.constant 0 : index
    %c0_4 = arith.constant 0 : index
    %4 = vector.load %arg2[%c0_2, %c0_3, %c0_4] : memref<2x16x64xbf16, #tpu.memory_space<vmem>>, vector<2x16x64xbf16>
    %5 = arith.extf %4 : vector<2x16x64xbf16> to vector<2x16x64xf32>
    %cst = arith.constant dense<0.000000e+00> : vector<2x16xf32>
    %6 = vector.multi_reduction <add>, %5, %cst [2] : vector<2x16x64xf32> to vector<2x16xf32>
    %7 = arith.addf %3, %6 : vector<2x16xf32>
    %c0_5 = arith.constant 0 : index
    %c0_6 = arith.constant 0 : index
    %8 = vector.load %arg6[%c0_5, %c0_6] : memref<2x16xf32, #tpu.memory_space<vmem>>, vector<2x16xf32>
    tpu.vector_store %arg6[%c0_5, %c0_6], %7 {strides = array<i32>} : memref<2x16xf32, #tpu.memory_space<vmem>>, vector<2x16xf32>,
    %c0_i32_7 = arith.constant 0 : i32
    %9 = arith.cmpi eq, %arg1, %c0_i32_7 : i32
    %10 = arith.extui %9 : i1 to i32
    %c0_i32_8 = arith.constant 0 : i32
    %11 = arith.cmpi ne, %10, %c0_i32_8 : i32
    scf.if %11 {
      %c0_9 = arith.constant 0 : index
      %c0_10 = arith.constant 0 : index
      %12 = vector.load %arg6[%c0_9, %c0_10] : memref<2x16xf32, #tpu.memory_space<vmem>>, vector<2x16xf32>
      %cst_11 = arith.constant 1.562500e-02 : f32
      %13 = vector.broadcast %cst_11 : f32 to vector<2x16xf32>
      %14 = arith.mulf %12, %13 : vector<2x16xf32>
      %cst_12 = arith.constant 0.000000e+00 : f32
      %15 = vector.broadcast %cst_12 : f32 to vector<2x1xf32>
      %16 = tpu.concatenate %15, %14, %15 in 1 : vector<2x1xf32>, vector<2x16xf32>, vector<2x1xf32> -> vector<2x18xf32>
      %cst_13 = arith.constant 0.000000e+00 : f32
      %17 = vector.broadcast %cst_13 : f32 to vector<2x16xf32>
      %c0_14 = arith.constant 0 : index
      %c0_15 = arith.constant 0 : index
      %18 = memref.load %arg3[%c0_14, %c0_15] : memref<1x3xf32, #tpu.memory_space<smem>>
      %19 = vector.extract_strided_slice %16 {offsets = [0, 0], sizes = [2, 16], strides = [1, 1]} : vector<2x18xf32> to vector<2x16xf32>
      %20 = vector.broadcast %18 : f32 to vector<2x16xf32>
      %21 = arith.mulf %20, %19 : vector<2x16xf32>
      %22 = arith.addf %17, %21 : vector<2x16xf32>
      %c0_16 = arith.constant 0 : index
      %c1 = arith.constant 1 : index
      %23 = memref.load %arg3[%c0_16, %c1] : memref<1x3xf32, #tpu.memory_space<smem>>
      %24 = vector.extract_strided_slice %16 {offsets = [0, 1], sizes = [2, 16], strides = [1, 1]} : vector<2x18xf32> to vector<2x16xf32>
      %25 = vector.broadcast %23 : f32 to vector<2x16xf32>
      %26 = arith.mulf %25, %24 : vector<2x16xf32>
      %27 = arith.addf %22, %26 : vector<2x16xf32>
      %c0_17 = arith.constant 0 : index
      %c2 = arith.constant 2 : index
      %28 = memref.load %arg3[%c0_17, %c2] : memref<1x3xf32, #tpu.memory_space<smem>>
      %29 = vector.extract_strided_slice %16 {offsets = [0, 2], sizes = [2, 16], strides = [1, 1]} : vector<2x18xf32> to vector<2x16xf32>
      %30 = vector.broadcast %28 : f32 to vector<2x16xf32>
      %31 = arith.mulf %30, %29 : vector<2x16xf32>
      %32 = arith.addf %27, %31 : vector<2x16xf32>
      %cst_18 = arith.constant 0.000000e+00 : f32
      %33 = vector.broadcast %cst_18 : f32 to vector<2x16xf32>
      %34 = arith.maximumf %32, %33 : vector<2x16xf32>
      %c0_19 = arith.constant 0 : index
      %c0_20 = arith.constant 0 : index
      %35 = vector.load %arg4[%c0_19, %c0_20] : memref<2x16xf32, #tpu.memory_space<vmem>>, vector<2x16xf32>
      %36 = vector.shape_cast %34 : vector<2x16xf32> to vector<2x1x16xf32>
      %37 = vector.shape_cast %35 : vector<2x16xf32> to vector<1x2x16xf32>
      %38 = vector.broadcast %36 : vector<2x1x16xf32> to vector<2x2x16xf32>
      %39 = vector.broadcast %37 : vector<1x2x16xf32> to vector<2x2x16xf32>
      %40 = arith.mulf %38, %39 : vector<2x2x16xf32>
      %cst_21 = arith.constant dense<0.000000e+00> : vector<2x2xf32>
      %41 = vector.multi_reduction <add>, %40, %cst_21 [2] : vector<2x2x16xf32> to vector<2x2xf32>
      %cst_22 = arith.constant 0.000000e+00 : f32
      %42 = vector.broadcast %cst_22 : f32 to vector<2x2xf32>
      %43 = arith.maximumf %41, %42 : vector<2x2xf32>
      %cst_23 = arith.constant dense<0xFF800000> : vector<2xf32>
      %44 = vector.multi_reduction <maximumf>, %43, %cst_23 [1] : vector<2x2xf32> to vector<2xf32>
      %45 = vector.shape_cast %44 : vector<2xf32> to vector<2x1xf32>
      %46 = vector.broadcast %45 : vector<2x1xf32> to vector<2x2xf32>
      %47 = arith.subf %43, %46 : vector<2x2xf32>
      %48 = math.exp %47 : vector<2x2xf32>
      %cst_24 = arith.constant dense<0.000000e+00> : vector<2xf32>
      %49 = vector.multi_reduction <add>, %48, %cst_24 [1] : vector<2x2xf32> to vector<2xf32>
      %50 = vector.shape_cast %49 : vector<2xf32> to vector<2x1xf32>
      %51 = vector.broadcast %50 : vector<2x1xf32> to vector<2x2xf32>
      %52 = arith.divf %48, %51 : vector<2x2xf32>
      %c0_25 = arith.constant 0 : index
      %c0_26 = arith.constant 0 : index
      %53 = vector.load %arg5[%c0_25, %c0_26] : memref<2x2xf32, #tpu.memory_space<vmem>>, vector<2x2xf32>
      tpu.vector_store %arg5[%c0_25, %c0_26], %52 {strides = array<i32>} : memref<2x2xf32, #tpu.memory_space<vmem>>, vector<2x2xf32>,
    } else {
    }
    return
  }
  func.func @transform_0(%arg0: i32, %arg1: i32) -> (i32, i32, i32) {
    %c0_i32 = arith.constant 0 : i32
    %c0_i32_0 = arith.constant 0 : i32
    return %arg0, %c0_i32, %arg1 : i32, i32, i32
  }
  func.func @transform_1(%arg0: i32, %arg1: i32) -> (i32, i32) {
    %c0_i32 = arith.constant 0 : i32
    %c0_i32_0 = arith.constant 0 : i32
    %c0_i32_1 = arith.constant 0 : i32
    return %c0_i32, %c0_i32_0 : i32, i32
  }
  func.func @transform_2(%arg0: i32, %arg1: i32) -> (i32, i32) {
    %c0_i32 = arith.constant 0 : i32
    %c0_i32_0 = arith.constant 0 : i32
    %c0_i32_1 = arith.constant 0 : i32
    return %c0_i32, %c0_i32_0 : i32, i32
  }
  func.func @transform_3(%arg0: i32, %arg1: i32) -> (i32, i32) {
    %c0_i32 = arith.constant 0 : i32
    %c0_i32_0 = arith.constant 0 : i32
    return %arg0, %c0_i32 : i32, i32
  }
}

</mosaic_0001>

<bundles_post_ra>
// kernel: tpu_custom_call.1
= control target key start
LH: loop header
LB: loop body
LE: loop exit
PB: predicated region body
PF: predicated region fallthrough
CT: control target
= control target key end

     0   :  { %8 = vsyncpa [#allocation4], 0  ;;  %s450_s0 = inlined_call_operand.hbm [shape: bf16[2,16,64], index: 0, kind: input, shape index: {}]   ;;  %s451_s1 = inlined_call_operand.hbm [shape: f32[1,3], index: 1, kind: input, shape index: {}]   ;;  %s452_s2 = inlined_call_operand.hbm [shape: f32[2,16], index: 2, kind: input, shape index: {}]   ;;  %s453_s3 = inlined_call_operand.hbm [shape: f32[2,2], index: 3, kind: output, shape index: {}]  }
   0x1   :  { %9 = vsyncpa [#allocation6], 0 }
   0x2   :  { %10 = vsyncpa [#allocation9], 0 }
   0x3   :  { %11 = vsyncpa [#allocation5], 0  ;;  %s16_s14 = sshll.u32 %s450_s0, 4  ;;  %s385_s15 = smov [#allocation3]   ;;  %s17_s14 = int_to_ptr.hbm [resolvable:$true] %s16_s14 }
   0x4   :  { %s18_s16 = sshll.u32 %s385_s15, 4  ;;  %s30_s19 = sshll.u32 %s451_s1, 4  ;;  %s19_s16 = int_to_ptr.vmem [resolvable:$true] %s18_s16  ;;  %s31_s19 = int_to_ptr.hbm [resolvable:$true] %s30_s19 }
   0x5   :  { %s386_s20 = smov 64   ;;  %s387_s21 = smov 4  }
   0x6   :  { %24 = dma.hbm_to_vmem [thread:$0]  %s17_s14, 256, %s19_s16, [#allocation4], %s386_s20, %s386_s20, %s387_s21  }
   0x7   :  { %s388_s22 = smov [#allocation7]   ;;  %s39_s25 = sshll.u32 %s452_s2, 4  ;;  %s40_s25 = int_to_ptr.hbm [resolvable:$true] %s39_s25 }
   0x8   :  { %33 = dma.hbm_to_smem %s31_s19, 16, %s388_s22, [#allocation6]  }
   0x9   :  { %s389_s0 = smov [#allocation8]  }
   0xa   :  { %s41_s26 = sshll.u32 %s389_s0, 4  ;;  %s42_s26 = int_to_ptr.vmem [resolvable:$true] %s41_s26 }
   0xb   :  { %44 = dma.hbm_to_vmem [thread:$0]  %s40_s25, 32, %s42_s26, [#allocation9]  }
   0xc   :  { %377 = dma.done.wait [#allocation4], 256  }
   0xd   :  { %378 = vsyncadd [#allocation4], 4294967040 }
   0xe   :  { %379 = dma.done.wait [#allocation6], 16  }
   0xf   :  { %380 = vsyncadd [#allocation6], 4294967280 }
  0x10   :  { %381 = dma.done.wait [#allocation9], 32  }
  0x11   :  { %382 = vsyncadd [#allocation9], 4294967264 }
  0x12   :  { %57 = sfence }
  0x13   :  { %v270_v0 = vld [vmem:[#allocation3 + $0x8] sm:$0xff]   ;;  %vm73_vm0 = vcmask 523264   ;;  %v263_v1 = vld [vmem:[#allocation3] sm:$0xff]   ;;  %vm62_vm1 = vcmask 123904   ;;  %v390_v10 = vmov 0.0   ;;  %v90_v11 = vlaneseq  ;;  %s391_s1 = smov 1  }
  0x14   :  { %v268_v2 = vunpack.c.l.bf16 %v270_v0  ;;  %v264_v3 = vunpack.c.l.bf16 %v263_v1  ;;  %v269_v6 = vunpack.c.h.bf16 %v270_v0  ;;  %v265_v7 = vunpack.c.h.bf16 %v263_v1  ;;  %63 = vst.msk [vmem:[#allocation2] sm:$0x3] %vm62_vm1, %v390_v10  ;;  %s260_s2 = sld [smem:[#allocation7 + $0x1]]  ;;  %s392_s28 = smov 126   ;;  %v140_v43 = vld [vmem:[#allocation8] sm:$0x3] }
  0x15   :  { %v426_v14 = vand.u32 127, %v90_v11  ;;  %vm95_vm2 = vcmask 130112   ;;  %vm100_vm3 = vcmask 1041409   ;;  %s261_s27 = sld [smem:[#allocation7 + $0x2]]  ;;  %vm115_vm4 = vcmask 7168   ;;  %s393_s29 = smov 127  }
  0x16   :  { %v80_v4 = vsel %vm73_vm0, %v268_v2, 0.0  ;;  %v74_v5 = vsel %vm73_vm0, %v264_v3, 0.0  ;;  %v83_v8 = vsel %vm73_vm0, %v269_v6, 0.0  ;;  %v77_v9 = vsel %vm73_vm0, %v265_v7, 0.0  ;;  %s119_s30 = sld [smem:[#allocation7]]  ;;  %s395_s4 = smov [#allocation10]  }
  0x17   :  { %81 = vadd.xlane.f32.xlu1 %v80_v4  ;;  %75 = vadd.xlane.f32.xlu0 %v74_v5  ;;  %v93_v15 = vadd.s32 4294967288, %v426_v14  ;;  %vm117_vm5 = vcmask 138240   ;;  %vm163_vm6 = vcmask 9216   ;;  %v394_v59 = vmov 0   ;;  %s246_s5 = sshll.u32 %s395_s4, 4  ;;  %s248_s8 = sshll.u32 %s453_s3, 4  ;;  %s247_s5 = int_to_ptr.vmem [resolvable:$true] %s246_s5  ;;  %s249_s8 = int_to_ptr.hbm [resolvable:$true] %s248_s8 }
  0x18   :  { %283 = vset.pattern.permute.xlu0 %v394_v59  ;;  %282 = vset.pattern.permute.xlu1 %v394_v59 }
  0x19   :  { %284 = vset.pattern.permute.xlu2 %v394_v59 }
  0x1a   :  { %v124_v29 = vstv %s260_s2 }
  0x1b   :  { %v64_v22 = vld [vmem:[#allocation2] sm:$0x3]  ;;  %v132_v30 = vstv %s261_s27 }
  0x1c   :  { %v120_v36 = vstv %s119_s30 }
  0x1f   :  { %84 = vadd.xlane.f32.xlu1 %v83_v8  ;;  %78 = vadd.xlane.f32.xlu0 %v77_v9 }
  0x8a   :  { %v82_v12 = vpop.xlane.xlu1 %81  ;;  %v76_v13 = vpop.xlane.xlu0 %75 }
  0x8b   :  { %v97_v18 = vperm.slane %v82_v12, %v426_v14  ;;  %v92_v19 = vperm.slane %v76_v13, %v426_v14 }
  0x92   :  { %v85_v16 = vpop.xlane.xlu1 %84  ;;  %v79_v17 = vpop.xlane.xlu0 %78 }
  0x93   :  { %v98_v20 = vperm.slane %v85_v16, %v93_v15  ;;  %v94_v21 = vperm.slane %v79_v17, %v93_v15 }
  0x95   :  { %v99_v23 = vsel %vm95_vm2, %v98_v20, %v97_v18  ;;  %v96_v24 = vsel %vm95_vm2, %v94_v21, %v92_v19 }
  0x96   :  { %v101_v25 = vsel %vm100_vm3, %v99_v23, %v96_v24 }
  0x97   :  { %v103_v26 = vadd.f32 %v101_v25, %v64_v22 }
  0x99   :  { %105 = vst.msk [vmem:[#allocation2] sm:$0x3] %vm62_vm1, %v103_v26 }
  0xa0   :  { %v109_v27 = vld [vmem:[#allocation2] sm:$0x3] }
  0xa1   :  { %v110_v28 = vmul.f32 0.015625, %v109_v27 }
  0xa3   :  { %112 = vrot.lane.b32.xlu2 %v110_v28, %s391_s1 }
  0xfd   :  { %v113_v31 = vpop.permute.xlu2 %112 }
  0xfe   :  { %v116_v32 = vsel %vm115_vm4, 0.0, %v113_v31 }
  0xff   :  { %v118_v33 = vsel %vm117_vm5, %v116_v32, 0.0 }
 0x100   :  { %v125_v34 = vmul.f32 %v124_v29, %v118_v33  ;;  %v133_v35 = vmul.f32 %v132_v30, %v118_v33  ;;  %v121_v38 = vmul.f32 %v120_v36, %v118_v33 }
 0x102   :  { %135 = vrot.lane.b32.xlu0 %v133_v35, %s392_s28  ;;  %127 = vrot.lane.b32.xlu2 %v125_v34, %s393_s29 }
 0x15c   :  { %v128_v37 = vpop.permute.xlu2 %127 }
 0x15d   :  { %v130_v39 = vadd.f32 %v128_v37, %v121_v38 }
 0x174   :  { %v136_v40 = vpop.permute.xlu0 %135 }
 0x175   :  { %v138_v41 = vadd.f32 %v136_v40, %v130_v39 }
 0x177   :  { %v139_v42 = vmax.f32 %v138_v41, 0.0 }
 0x179   :  { %v142_v44 = vrot.slane %v139_v42, 1  ;;  %v143_v45 = vperm.slane %v139_v42, 0 }
 0x17b   :  { %v144_v46 = vperm.slane %v142_v44, 0  ;;  %v147_v47 = vmul.f32 %v143_v45, %v140_v43 }
 0x17d   :  { %v149_v48 = vsel %vm62_vm1, %v147_v47, 0.0  ;;  %v148_v49 = vmul.f32 %v144_v46, %v140_v43 }
 0x17e   :  { %150 = vadd.xlane.f32.xlu1 %v149_v48 }
 0x17f   :  { %v152_v50 = vsel %vm62_vm1, %v148_v49, 0.0 }
 0x180   :  { %153 = vadd.xlane.f32.xlu2 %v152_v50 }
 0x1f1   :  { %v151_v51 = vpop.xlane.xlu1 %150 }
 0x1f2   :  { %v155_v52 = vmax.f32 %v151_v51, 0.0 }
 0x1f3   :  { %v154_v53 = vpop.xlane.xlu2 %153 }
 0x1f4   :  { %v156_v54 = vmax.f32 %v154_v53, 0.0  ;;  %v159_v55 = vperm.slane %v155_v52, %v426_v14 }
 0x1f6   :  { %v160_v56 = vperm.slane %v156_v54, %v426_v14 }
 0x1f8   :  { %v161_v57 = vsel %vm100_vm3, %v160_v56, %v159_v55 }
 0x1f9   :  { %v164_v58 = vsel %vm163_vm6, %v161_v57, -inf }
 0x1fa   :  { %165 = vmax.xlane.f32.xlu1 %v164_v58 }
 0x26d   :  { %v166_v60 = vpop.xlane.xlu1 %165 }
 0x26e   :  { %v168_v61 = vperm.slane %v166_v60, 0  ;;  %v169_v62 = vperm.slane %v166_v60, 1 }
 0x270   :  { %v172_v63 = vsub.f32 %v155_v52, %v168_v61  ;;  %v173_v0 = vsub.f32 %v156_v54, %v169_v62 }
 0x272   :  { %v174_v1 = vmul.f32 1.442695, %v172_v63  ;;  %v176_v2 = vmul.f32 1.442695, %v173_v0 }
 0x274   :  { %285 = vpow2.f32 %v174_v1 }
 0x275   :  { %287 = vpow2.f32 %v176_v2 }
 0x27a   :  { %v286_v3 = vpop.eup %285 }
 0x27b   :  { %v288_v4 = vpop.eup %287  ;;  %181 = vperm.xlu1 %282, %v286_v3  }
 0x27c   :  { %184 = vperm.xlu0 %283, %v288_v4  }
 0x2ed   :  { %v182_v5 = vpop.permute.xlu1 %181 }
 0x2ee   :  { %v185_v6 = vpop.permute.xlu0 %184  ;;  %v186_v7 = vperm.slane %v182_v5, %v426_v14 }
 0x2ef   :  { %v187_v8 = vperm.slane %v185_v6, %v426_v14 }
 0x2f1   :  { %v188_v9 = vsel %vm100_vm3, %v187_v8, %v186_v7 }
 0x2f2   :  { %v190_v10 = vsel %vm163_vm6, %v188_v9, 0.0 }
 0x2f3   :  { %191 = vadd.xlane.f32.xlu0 %v190_v10 }
 0x366   :  { %v192_v11 = vpop.xlane.xlu0 %191 }
 0x367   :  { %v194_v12 = vperm.slane %v192_v11, 0  ;;  %v195_v13 = vperm.slane %v192_v11, 1 }
 0x369   :  { %289 = vrcp.f32 %v194_v12  ;;  %v209_v21 = vand.u32 2147483648, %v194_v12  ;;  %v224_v22 = vand.u32 2147483648, %v195_v13  ;;  %v207_v24 = vand.u32 2147483647, %v194_v12 }
 0x36a   :  { %291 = vrcp.f32 %v195_v13  ;;  %v222_v26 = vand.u32 2147483647, %v195_v13  ;;  %vm203_vm9 = vweird.f32 %v194_v12  ;;  %vm218_vm10 = vweird.f32 %v195_v13 }
 0x36b   :  { %v210_v29 = vor.u32 1.1754944e-38, %v209_v21  ;;  %v225_v30 = vor.u32 1.1754944e-38, %v224_v22  ;;  %vm208_vm13 = vcmp.eq.f32.partialorder %v207_v24, 8.507059e+37 }
 0x36c   :  { %vm223_vm14 = vcmp.eq.f32.partialorder %v222_v26, 8.507059e+37 }
 0x36f   :  { %v290_v15 = vpop.eup %289 }
 0x370   :  { %v292_v16 = vpop.eup %291  ;;  %v199_v17 = vmul.f32 %v290_v15, %v194_v12  ;;  %vm204_vm7 = vweird.f32 %v290_v15 }
 0x371   :  { %v214_v18 = vmul.f32 %v292_v16, %v195_v13  ;;  %vm219_vm8 = vweird.f32 %v292_v16  ;;  %vm205_vm11 = vmor %vm203_vm9, %vm204_vm7 }
 0x372   :  { %v200_v19 = vsub.f32 1.0, %v199_v17  ;;  %vm220_vm12 = vmor %vm218_vm10, %vm219_vm8 }
 0x373   :  { %v215_v20 = vsub.f32 1.0, %v214_v18 }
 0x374   :  { %v201_v23 = vmul.f32 %v290_v15, %v200_v19 }
 0x375   :  { %v216_v25 = vmul.f32 %v292_v16, %v215_v20 }
 0x376   :  { %v202_v27 = vadd.f32 %v290_v15, %v201_v23 }
 0x377   :  { %v217_v28 = vadd.f32 %v292_v16, %v216_v25 }
 0x378   :  { %v206_v31 = vsel %vm205_vm11, %v290_v15, %v202_v27 }
 0x379   :  { %v221_v32 = vsel %vm220_vm12, %v292_v16, %v217_v28  ;;  %v211_v33 = vsel %vm208_vm13, %v210_v29, %v206_v31 }
 0x37a   :  { %v226_v34 = vsel %vm223_vm14, %v225_v30, %v221_v32  ;;  %v212_v35 = vmul.f32 %v286_v3, %v211_v33 }
 0x37b   :  { %v227_v36 = vmul.f32 %v288_v4, %v226_v34 }
 0x37c   :  { %231 = vperm.xlu1 %282, %v212_v35  }
 0x37d   :  { %234 = vperm.xlu2 %284, %v227_v36  }
 0x3d7   :  { %v235_v37 = vpop.permute.xlu2 %234 }
 0x3d8   :  { %v237_v39 = vperm.slane %v235_v37, %v426_v14 }
 0x3ee   :  { %v232_v38 = vpop.permute.xlu1 %231 }
 0x3ef   :  { %v236_v40 = vperm.slane %v232_v38, %v426_v14 }
 0x3f1   :  { %v238_v41 = vsel %vm100_vm3, %v237_v39, %v236_v40 }
 0x3f2   :  { %240 = vst.msk [vmem:[#allocation10] sm:$0x3] %vm163_vm6, %v238_v41 }
 0x3f3   :  { %251 = dma.vmem_to_hbm [thread:$0]  %s247_s5, 32, %s249_s8, [#allocation5]  }
 0x3f4   :  { %383 = dma.done.wait [#allocation5], 32  }
 0x3f5   :  { %384 = vsyncadd [#allocation5], 4294967264 }
 0x3f6   :  { %256 = vsyncpa [#allocation4], 1 }
 0x3f7   :  { %257 = vsyncpa [#allocation9], 1 }
 0x3f8   :  { %258 = vsyncpa [#allocation5], 1 }
 0x3f9   :  { %259 = vsyncpa [#allocation6], 1 }

</bundles_post_ra>
